<compile_context>
chip_gen: v5e
topology: v5e:2x2
jax: 0.10.0
libtpu: 0.0.40
codegen_flags: <defaults>
</compile_context>

<pallas_src>
import functools

import jax
import jax.numpy as jnp
from jax import lax
from jax.experimental import pallas as pl
from jax.experimental.pallas import tpu as pltpu

EPS = 1e-5


def _round_up(v, m):
    return (v + m - 1) // m * m


def _conv_stats_kernel(p_ref, w_ref, b_ref, y_ref, sum_ref, ssq_ref, *, m_total):
    # p_ref  : (TM, 16*Cin)   im2col patch tile
    # w_ref  : (16*Cin, CP)   conv weight (resident)
    # b_ref  : (1, CP)        conv bias
    # y_ref  : (TM, CP)       conv output tile (pre-BN)
    # sum_ref, ssq_ref : (1, CP) per-channel sum / sum-of-squares accumulators
    #                    (resident across the "arbitrary" grid axis)
    i = pl.program_id(0)

    @pl.when(i == 0)
    def _():
        sum_ref[...] = jnp.zeros_like(sum_ref)
        ssq_ref[...] = jnp.zeros_like(ssq_ref)

    y = jnp.dot(p_ref[...], w_ref[...], preferred_element_type=jnp.float32)
    y = y + b_ref[...]
    y_ref[...] = y

    # Mask padded rows (M padded up to a multiple of TM) out of the statistics.
    tm = p_ref.shape[0]
    row = i * tm + lax.broadcasted_iota(jnp.int32, (tm, 1), 0)
    ym = jnp.where(row < m_total, y, 0.0)
    sum_ref[...] += jnp.sum(ym, axis=0, keepdims=True)
    ssq_ref[...] += jnp.sum(ym * ym, axis=0, keepdims=True)


def _bn_relu_kernel(y_ref, scale_ref, shift_ref, o_ref):
    # y = (conv - mean) * inv * gamma + beta  folded into  y * scale + shift
    o_ref[...] = jnp.maximum(y_ref[...] * scale_ref[...] + shift_ref[...], 0.0)


def encoder_forward(x, w_pt, bias, gamma, beta, *, tile_m=256):
    # x    : (N, Cin, H, W) float32 (NCHW, PyTorch convention)
    # w_pt : (Cout, Cin, 4, 4)  Conv2d weight (PyTorch layout)
    n, cin, h, w = x.shape
    assert h % 2 == 0 and w % 2 == 0, "stride-2 conv with k=4, p=1 expects even H, W"
    cout = w_pt.shape[0]
    ho, wo = h // 2, w // 2
    m = n * ho * wo
    k = 16 * cin                                  # fused 4x4 taps * Cin contraction
    cp = _round_up(max(cout, 128), 128)           # lane-dense output channels

    # ---- im2col in the wrapper: (M, 16*Cin) patches of the zero-padded NHWC input.
    # Output (i, j) reads padded rows 2i+kh, cols 2j+kw for kh, kw in 0..3.
    x_nhwc = jnp.transpose(x, (0, 2, 3, 1))                       # (N, H, W, Cin)
    xp = jnp.pad(x_nhwc, ((0, 0), (1, 1), (1, 1), (0, 0)))        # (N, H+2, W+2, Cin)
    cols = []
    for kh in range(4):
        for kw in range(4):
            cols.append(lax.slice(xp, (0, kh, kw, 0),
                                  (n, kh + 2 * ho - 1, kw + 2 * wo - 1, cin),
                                  (1, 2, 2, 1)))                   # (N, Ho, Wo, Cin)
    patches = jnp.concatenate(cols, axis=-1).reshape(m, k)         # (M, 16*Cin)

    tm = min(tile_m, _round_up(m, 8))
    m_pad = _round_up(m, tm)
    if m_pad != m:
        patches = jnp.pad(patches, ((0, m_pad - m), (0, 0)))

    # ---- weight (Cout, Cin, 4, 4) -> (16*Cin, CP), matching the (kh, kw, cin) patch order.
    w_k = jnp.transpose(w_pt, (2, 3, 1, 0)).reshape(k, cout)
    w_k = jnp.pad(w_k, ((0, 0), (0, cp - cout)))
    b_p = jnp.pad(bias, (0, cp - cout)).reshape(1, cp)
    g_p = jnp.pad(gamma, (0, cp - cout)).reshape(1, cp)
    bt_p = jnp.pad(beta, (0, cp - cout)).reshape(1, cp)

    grid = (m_pad // tm,)

    # ---- pass 1: conv (single fused MXU matmul per tile) + per-channel sum / sumsq
    y_conv, s, ssq = pl.pallas_call(
        functools.partial(_conv_stats_kernel, m_total=m),
        out_shape=(jax.ShapeDtypeStruct((m_pad, cp), jnp.float32),
                   jax.ShapeDtypeStruct((1, cp), jnp.float32),
                   jax.ShapeDtypeStruct((1, cp), jnp.float32)),
        grid=grid,
        in_specs=[pl.BlockSpec((tm, k), lambda i: (i, 0)),
                  pl.BlockSpec((k, cp), lambda i: (0, 0)),
                  pl.BlockSpec((1, cp), lambda i: (0, 0))],
        out_specs=(pl.BlockSpec((tm, cp), lambda i: (i, 0)),
                   pl.BlockSpec((1, cp), lambda i: (0, 0)),
                   pl.BlockSpec((1, cp), lambda i: (0, 0))),
        compiler_params=pltpu.CompilerParams(
            dimension_semantics=("arbitrary",)),   # stats accumulate across this axis
    )(patches, w_k, b_p)

    # ---- tiny per-channel BN math in plain JAX (f32, biased variance like training BN)
    cnt = jnp.float32(m)
    mean = s / cnt
    var = jnp.maximum(ssq / cnt - mean * mean, 0.0)
    inv = lax.rsqrt(var + EPS)
    scale = g_p * inv
    shift = bt_p - mean * scale

    # ---- pass 2: normalize + ReLU (mem-bound, fully parallel over M tiles)
    out = pl.pallas_call(
        _bn_relu_kernel,
        out_shape=jax.ShapeDtypeStruct((m_pad, cp), jnp.float32),
        grid=grid,
        in_specs=[pl.BlockSpec((tm, cp), lambda i: (i, 0)),
                  pl.BlockSpec((1, cp), lambda i: (0, 0)),
                  pl.BlockSpec((1, cp), lambda i: (0, 0))],
        out_specs=pl.BlockSpec((tm, cp), lambda i: (i, 0)),
        compiler_params=pltpu.CompilerParams(
            dimension_semantics=("parallel",)),
    )(y_conv, scale, shift)

    # drop M / channel padding, back to NCHW
    out = out[:m, :cout].reshape(n, ho, wo, cout)
    return jnp.transpose(out, (0, 3, 1, 2))                        # (N, Cout, H/2, W/2)


def encoder_reference(x, w_pt, bias, gamma, beta):
    # Pure-JAX reference mirroring the PyTorch forward (training-mode BN).
    y = lax.conv_general_dilated(
        x, w_pt, window_strides=(2, 2), padding=[(1, 1), (1, 1)],
        dimension_numbers=('NCHW', 'OIHW', 'NCHW'))
    y = y + bias.reshape(1, -1, 1, 1)
    mean = jnp.mean(y, axis=(0, 2, 3), keepdims=True)
    var = jnp.mean((y - mean) ** 2, axis=(0, 2, 3), keepdims=True)
    y = (y - mean) * lax.rsqrt(var + EPS) * gamma.reshape(1, -1, 1, 1) \
        + beta.reshape(1, -1, 1, 1)
    return jnp.maximum(y, 0.0)


if __name__ == "__main__":
    N, Cin, Cout, H, W = 2, 4, 8, 16, 16
    key = jax.random.PRNGKey(0)
    kx, kw_, kb, kg, kbt = jax.random.split(key, 5)

    x = jax.random.normal(kx, (N, Cin, H, W), dtype=jnp.float32)

    # shapes from nn.Conv2d(Cin, Cout, 4, 2, 1) + nn.BatchNorm2d(Cout)
    w_pt = 0.1 * jax.random.normal(kw_, (Cout, Cin, 4, 4), dtype=jnp.float32)
    bias = 0.1 * jax.random.normal(kb, (Cout,), dtype=jnp.float32)
    gamma = 1.0 + 0.1 * jax.random.normal(kg, (Cout,), dtype=jnp.float32)
    beta = 0.1 * jax.random.normal(kbt, (Cout,), dtype=jnp.float32)

    out = encoder_forward(x, w_pt, bias, gamma, beta)
    out = jax.block_until_ready(out)

    ref = encoder_reference(x, w_pt, bias, gamma, beta)
    assert out.shape == (N, Cout, H // 2, W // 2), out.shape
    assert jnp.allclose(out, ref, rtol=2e-4, atol=2e-4), \
        f"max abs diff = {jnp.max(jnp.abs(out - ref))}"

    print("KERNEL_OK")
</pallas_src>

<mosaic_0001>
module attributes {stable_mosaic.version = 11 : i64} {
  func.func @_conv_stats_kernel(%arg0: i32, %arg1: memref<128x64xf32, #tpu.memory_space<vmem>>, %arg2: memref<64x128xf32, #tpu.memory_space<vmem>>, %arg3: memref<1x128xf32, #tpu.memory_space<vmem>>, %arg4: memref<128x128xf32, #tpu.memory_space<vmem>>, %arg5: memref<1x128xf32, #tpu.memory_space<vmem>>, %arg6: memref<1x128xf32, #tpu.memory_space<vmem>>) attributes {dimension_semantics = [#tpu.dimension_semantics<arbitrary>], iteration_bounds = array<i64: 1>, scalar_prefetch = 0 : i64, scratch_operands = 0 : i64, tpu.core_type = #tpu.core_type<tc>, window_params = [{transform_indices = @transform_0, window_bounds = array<i64: 128, 64>}, {pipeline_mode = #tpu.pipeline_mode<synchronous>, transform_indices = @transform_1, window_bounds = array<i64: 64, 128>}, {pipeline_mode = #tpu.pipeline_mode<synchronous>, transform_indices = @transform_2, window_bounds = array<i64: 1, 128>}, {transform_indices = @transform_3, window_bounds = array<i64: 128, 128>}, {pipeline_mode = #tpu.pipeline_mode<synchronous>, transform_indices = @transform_4, window_bounds = array<i64: 1, 128>}, {pipeline_mode = #tpu.pipeline_mode<synchronous>, transform_indices = @transform_5, window_bounds = array<i64: 1, 128>}]} {
    %c0_i32 = arith.constant 0 : i32
    %0 = arith.cmpi eq, %arg0, %c0_i32 : i32
    %1 = arith.extui %0 : i1 to i32
    %c0_i32_0 = arith.constant 0 : i32
    %2 = arith.cmpi ne, %1, %c0_i32_0 : i32
    scf.if %2 {
      %cst_20 = arith.constant 0.000000e+00 : f32
      %31 = vector.broadcast %cst_20 : f32 to vector<1x128xf32>
      %c0_21 = arith.constant 0 : index
      %c0_22 = arith.constant 0 : index
      %32 = vector.load %arg5[%c0_21, %c0_22] : memref<1x128xf32, #tpu.memory_space<vmem>>, vector<1x128xf32>
      tpu.vector_store %arg5[%c0_21, %c0_22], %31 {strides = array<i32>} : memref<1x128xf32, #tpu.memory_space<vmem>>, vector<1x128xf32>,
      %cst_23 = arith.constant 0.000000e+00 : f32
      %33 = vector.broadcast %cst_23 : f32 to vector<1x128xf32>
      %c0_24 = arith.constant 0 : index
      %c0_25 = arith.constant 0 : index
      %34 = vector.load %arg6[%c0_24, %c0_25] : memref<1x128xf32, #tpu.memory_space<vmem>>, vector<1x128xf32>
      tpu.vector_store %arg6[%c0_24, %c0_25], %33 {strides = array<i32>} : memref<1x128xf32, #tpu.memory_space<vmem>>, vector<1x128xf32>,
    } else {
    }
    %c0 = arith.constant 0 : index
    %c0_1 = arith.constant 0 : index
    %3 = vector.load %arg1[%c0, %c0_1] : memref<128x64xf32, #tpu.memory_space<vmem>>, vector<128x64xf32>
    %c0_2 = arith.constant 0 : index
    %c0_3 = arith.constant 0 : index
    %4 = vector.load %arg2[%c0_2, %c0_3] : memref<64x128xf32, #tpu.memory_space<vmem>>, vector<64x128xf32>
    %cst = arith.constant dense<0.000000e+00> : vector<128x128xf32>
    %5 = tpu.matmul %3, %4, %cst {dimension_numbers = #tpu.dot_dimension_numbers<[1], [0], [0], [1], [0, 0, 1, 1], [], []>} : vector<128x64xf32>, vector<64x128xf32>, vector<128x128xf32> -> vector<128x128xf32>
    %c0_4 = arith.constant 0 : index
    %c0_5 = arith.constant 0 : index
    %6 = vector.load %arg3[%c0_4, %c0_5] : memref<1x128xf32, #tpu.memory_space<vmem>>, vector<1x128xf32>
    %7 = vector.broadcast %6 : vector<1x128xf32> to vector<128x128xf32>
    %8 = arith.addf %5, %7 : vector<128x128xf32>
    %c0_6 = arith.constant 0 : index
    %c0_7 = arith.constant 0 : index
    %9 = vector.load %arg4[%c0_6, %c0_7] : memref<128x128xf32, #tpu.memory_space<vmem>>, vector<128x128xf32>
    tpu.vector_store %arg4[%c0_6, %c0_7], %8 {strides = array<i32>} : memref<128x128xf32, #tpu.memory_space<vmem>>, vector<128x128xf32>,
    %c128_i32 = arith.constant 128 : i32
    %10 = arith.muli %arg0, %c128_i32 : i32
    %11 = tpu.iota {dimensions = array<i32: 0>} : vector<128x1xi32>
    %12 = vector.broadcast %10 : i32 to vector<128x1xi32>
    %13 = arith.addi %12, %11 : vector<128x1xi32>
    %c128_i32_8 = arith.constant 128 : i32
    %14 = vector.broadcast %c128_i32_8 : i32 to vector<128x1xi32>
    %15 = arith.cmpi slt, %13, %14 : vector<128x1xi32>
    %cst_9 = arith.constant 0.000000e+00 : f32
    %16 = vector.shape_cast %15 : vector<128x1xi1> to vector<128x1xi1>
    %17 = vector.broadcast %16 : vector<128x1xi1> to vector<128x128xi1>
    %18 = vector.broadcast %cst_9 : f32 to vector<128x128xf32>
    %19 = arith.select %17, %8, %18 : vector<128x128xi1>, vector<128x128xf32>
    %c0_10 = arith.constant 0 : index
    %c0_11 = arith.constant 0 : index
    %20 = vector.load %arg5[%c0_10, %c0_11] : memref<1x128xf32, #tpu.memory_space<vmem>>, vector<1x128xf32>
    %cst_12 = arith.constant dense<0.000000e+00> : vector<128xf32>
    %21 = vector.multi_reduction <add>, %19, %cst_12 [0] : vector<128x128xf32> to vector<128xf32>
    %22 = vector.shape_cast %21 : vector<128xf32> to vector<1x128xf32>
    %23 = arith.addf %20, %22 : vector<1x128xf32>
    %c0_13 = arith.constant 0 : index
    %c0_14 = arith.constant 0 : index
    %24 = vector.load %arg5[%c0_13, %c0_14] : memref<1x128xf32, #tpu.memory_space<vmem>>, vector<1x128xf32>
    tpu.vector_store %arg5[%c0_13, %c0_14], %23 {strides = array<i32>} : memref<1x128xf32, #tpu.memory_space<vmem>>, vector<1x128xf32>,
    %c0_15 = arith.constant 0 : index
    %c0_16 = arith.constant 0 : index
    %25 = vector.load %arg6[%c0_15, %c0_16] : memref<1x128xf32, #tpu.memory_space<vmem>>, vector<1x128xf32>
    %26 = arith.mulf %19, %19 : vector<128x128xf32>
    %cst_17 = arith.constant dense<0.000000e+00> : vector<128xf32>
    %27 = vector.multi_reduction <add>, %26, %cst_17 [0] : vector<128x128xf32> to vector<128xf32>
    %28 = vector.shape_cast %27 : vector<128xf32> to vector<1x128xf32>
    %29 = arith.addf %25, %28 : vector<1x128xf32>
    %c0_18 = arith.constant 0 : index
    %c0_19 = arith.constant 0 : index
    %30 = vector.load %arg6[%c0_18, %c0_19] : memref<1x128xf32, #tpu.memory_space<vmem>>, vector<1x128xf32>
    tpu.vector_store %arg6[%c0_18, %c0_19], %29 {strides = array<i32>} : memref<1x128xf32, #tpu.memory_space<vmem>>, vector<1x128xf32>,
    return
  }
  func.func @transform_0(%arg0: i32) -> (i32, i32) {
    %c0_i32 = arith.constant 0 : i32
    %c0_i32_0 = arith.constant 0 : i32
    return %arg0, %c0_i32 : i32, i32
  }
  func.func @transform_1(%arg0: i32) -> (i32, i32) {
    %c0_i32 = arith.constant 0 : i32
    %c0_i32_0 = arith.constant 0 : i32
    %c0_i32_1 = arith.constant 0 : i32
    return %c0_i32, %c0_i32_0 : i32, i32
  }
  func.func @transform_2(%arg0: i32) -> (i32, i32) {
    %c0_i32 = arith.constant 0 : i32
    %c0_i32_0 = arith.constant 0 : i32
    %c0_i32_1 = arith.constant 0 : i32
    return %c0_i32, %c0_i32_0 : i32, i32
  }
  func.func @transform_3(%arg0: i32) -> (i32, i32) {
    %c0_i32 = arith.constant 0 : i32
    %c0_i32_0 = arith.constant 0 : i32
    return %arg0, %c0_i32 : i32, i32
  }
  func.func @transform_4(%arg0: i32) -> (i32, i32) {
    %c0_i32 = arith.constant 0 : i32
    %c0_i32_0 = arith.constant 0 : i32
    %c0_i32_1 = arith.constant 0 : i32
    return %c0_i32, %c0_i32_0 : i32, i32
  }
  func.func @transform_5(%arg0: i32) -> (i32, i32) {
    %c0_i32 = arith.constant 0 : i32
    %c0_i32_0 = arith.constant 0 : i32
    %c0_i32_1 = arith.constant 0 : i32
    return %c0_i32, %c0_i32_0 : i32, i32
  }
}

</mosaic_0001>

<bundles_post_ra>
// kernel: tpu_custom_call.1
= control target key start
LH: loop header
LB: loop body
LE: loop exit
PB: predicated region body
PF: predicated region fallthrough
CT: control target
= control target key end

     0   :  { %11 = vsyncpa [#allocation3], 0  ;;  %s690_s0 = inlined_call_operand.vmem [shape: f32[128,64], index: 0, kind: input, shape index: {}]   ;;  %s691_s1 = inlined_call_operand.vmem [shape: f32[64,128], index: 1, kind: input, shape index: {}]   ;;  %s692_s2 = inlined_call_operand.vmem [shape: f32[1,128], index: 2, kind: input, shape index: {}]   ;;  %s693_s3 = inlined_call_operand.hbm [shape: f32[128,128], index: 3, kind: output, shape index: {0}]   ;;  %s694_s4 = inlined_call_operand.hbm [shape: f32[1,128], index: 4, kind: output, shape index: {1}]   ;;  %s695_s5 = inlined_call_operand.hbm [shape: f32[1,128], index: 5, kind: output, shape index: {2}]  }
   0x1   :  { %v48_v0 = vld [vmem:[%s691_s1 + $0x38] sm:$0xff]  ;;  %v47_v1 = vld [vmem:[%s691_s1 + $0x30] sm:$0xff]  ;;  %v46_v2 = vld [vmem:[%s691_s1 + $0x28] sm:$0xff] }
   0x2   :  { %110 = vmatpush.msra.mxu0 %v48_v0  ;;  %411 = vmatpush.msra.mxu1 %v48_v0  ;;  %v45_v3 = vld [vmem:[%s691_s1 + $0x20] sm:$0xff]  ;;  %v44_v4 = vld [vmem:[%s691_s1 + $0x18] sm:$0xff] }
   0x3   :  { %412 = vmatpush.msra.mxu2 %v48_v0  ;;  %413 = vmatpush.msra.mxu3 %v48_v0 }
   0x4   :  { %111 = vmatpush.msra.mxu0 %v47_v1  ;;  %414 = vmatpush.msra.mxu1 %v47_v1 }
   0x5   :  { %415 = vmatpush.msra.mxu2 %v47_v1  ;;  %416 = vmatpush.msra.mxu3 %v47_v1 }
   0x6   :  { %112 = vmatpush.msra.mxu0 %v46_v2  ;;  %417 = vmatpush.msra.mxu1 %v46_v2 }
   0x7   :  { %418 = vmatpush.msra.mxu2 %v46_v2  ;;  %419 = vmatpush.msra.mxu3 %v46_v2 }
   0x8   :  { %12 = vsyncpa [#allocation5], 0  ;;  %113 = vmatpush.msra.mxu0 %v45_v3  ;;  %420 = vmatpush.msra.mxu1 %v45_v3  ;;  %v43_v5 = vld [vmem:[%s691_s1 + $0x10] sm:$0xff]  ;;  %v42_v6 = vld [vmem:[%s691_s1 + $0x8] sm:$0xff]  ;;  %vm53_vm0 = vcmask 523264   ;;  %v518_v57 = vmov 0.0  }
   0x9   :  { %421 = vmatpush.msra.mxu2 %v45_v3  ;;  %422 = vmatpush.msra.mxu3 %v45_v3  ;;  %v41_v7 = vld [vmem:[%s691_s1] sm:$0xff]  ;;  %v26_v12 = vld [vmem:[%s690_s0 + $0x8] sm:$0xff]  ;;  %v27_v16 = vld [vmem:[%s690_s0 + $0x10] sm:$0xff]  ;;  %23 = vst [vmem:[#allocation4] sm:$0x1] %v518_v57  ;;  %s352_s18 = sshll.u32 %s693_s3, 4  ;;  %s353_s18 = int_to_ptr.hbm [resolvable:$true] %s352_s18 }
   0xa   :  { %114 = vmatpush.msra.mxu0 %v44_v4  ;;  %423 = vmatpush.msra.mxu1 %v44_v4  ;;  %v25_v8 = vld [vmem:[%s690_s0] sm:$0xff]  ;;  %v30_v13 = vld [vmem:[%s690_s0 + $0x28] sm:$0xff]  ;;  %v31_v17 = vld [vmem:[%s690_s0 + $0x30] sm:$0xff]  ;;  %24 = vst [vmem:[#allocation6] sm:$0x1] %v518_v57  ;;  %s520_s3 = smov 128  }
   0xb   :  { %424 = vmatpush.msra.mxu2 %v44_v4  ;;  %425 = vmatpush.msra.mxu3 %v44_v4  ;;  %v29_v9 = vld [vmem:[%s690_s0 + $0x20] sm:$0xff]  ;;  %v34_v14 = vld [vmem:[%s690_s0 + $0x48] sm:$0xff]  ;;  %v35_v18 = vld [vmem:[%s690_s0 + $0x50] sm:$0xff]  ;;  %s521_s19 = smov 8   ;;  %s522_s20 = smov [#allocation4]  }
   0xc   :  { %115 = vmatpush.msra.mxu0 %v43_v5  ;;  %426 = vmatpush.msra.mxu1 %v43_v5  ;;  %v33_v10 = vld [vmem:[%s690_s0 + $0x40] sm:$0xff]  ;;  %v38_v15 = vld [vmem:[%s690_s0 + $0x68] sm:$0xff]  ;;  %v39_v19 = vld [vmem:[%s690_s0 + $0x70] sm:$0xff]  ;;  %s364_s21 = sshll.u32 %s522_s20, 4  ;;  %s366_s24 = sshll.u32 %s694_s4, 4  ;;  %s365_s21 = int_to_ptr.vmem [resolvable:$true] %s364_s21  ;;  %s367_s24 = int_to_ptr.hbm [resolvable:$true] %s366_s24 }
   0xd   :  { %427 = vmatpush.msra.mxu2 %v43_v5  ;;  %428 = vmatpush.msra.mxu3 %v43_v5  ;;  %v37_v11 = vld [vmem:[%s690_s0 + $0x60] sm:$0xff]  ;;  %v28_v20 = vld [vmem:[%s690_s0 + $0x18] sm:$0xff]  ;;  %s523_s25 = smov [#allocation6]   ;;  %s377_s29 = sshll.u32 %s695_s5, 4  ;;  %s378_s29 = int_to_ptr.hbm [resolvable:$true] %s377_s29 }
   0xe   :  { %116 = vmatpush.msra.mxu0 %v42_v6  ;;  %429 = vmatpush.msra.mxu1 %v42_v6  ;;  %v32_v21 = vld [vmem:[%s690_s0 + $0x38] sm:$0xff]  ;;  %v645_v24 = vld [vmem:[%s692_s2] ss:$0 sm:$0xff]  ;;  %s375_s26 = sshll.u32 %s523_s25, 4  ;;  %s376_s26 = int_to_ptr.vmem [resolvable:$true] %s375_s26 }
   0xf   :  { %430 = vmatpush.msra.mxu2 %v42_v6  ;;  %431 = vmatpush.msra.mxu3 %v42_v6  ;;  %v36_v22 = vld [vmem:[%s690_s0 + $0x58] sm:$0xff] }
  0x10   :  { %117 = vmatpush.msra.mxu0 %v41_v7  ;;  %432 = vmatpush.msra.mxu1 %v41_v7  ;;  %v40_v23 = vld [vmem:[%s690_s0 + $0x78] sm:$0xff]  ;;  %s519_s0 = smov [#allocation2]  }
  0x11   :  { %395 = vmatmul.msk.f32.vlgmr.msra.gmra.mxu0 %vm53_vm0, %v25_v8  ;;  %399 = vmatmul.msk.f32.vlgmr.msra.gmra.mxu1 %vm53_vm0, %v29_v9  ;;  %s350_s2 = sshll.u32 %s519_s0, 4  ;;  %s351_s2 = int_to_ptr.vmem [resolvable:$true] %s350_s2 }
  0x12   :  { %433 = vmatpush.msra.mxu2 %v41_v7  ;;  %434 = vmatpush.msra.mxu3 %v41_v7 }
  0x13   :  { %403 = vmatmul.msk.f32.vlgmr.msra.gmra.mxu2 %vm53_vm0, %v33_v10  ;;  %407 = vmatmul.msk.f32.vlgmr.msra.gmra.mxu3 %vm53_vm0, %v37_v11 }
  0x19   :  { %396 = vmatmul.msk.f32.gmra.mxu0 %vm53_vm0, %v26_v12  ;;  %400 = vmatmul.msk.f32.gmra.mxu1 %vm53_vm0, %v30_v13 }
  0x1b   :  { %404 = vmatmul.msk.f32.gmra.mxu2 %vm53_vm0, %v34_v14  ;;  %408 = vmatmul.msk.f32.gmra.mxu3 %vm53_vm0, %v38_v15 }
  0x21   :  { %397 = vmatmul.msk.f32.gmra.mxu0 %vm53_vm0, %v27_v16  ;;  %401 = vmatmul.msk.f32.gmra.mxu1 %vm53_vm0, %v31_v17 }
  0x23   :  { %405 = vmatmul.msk.f32.gmra.mxu2 %vm53_vm0, %v35_v18  ;;  %409 = vmatmul.msk.f32.gmra.mxu3 %vm53_vm0, %v39_v19 }
  0x29   :  { %398 = vmatmul.msk.f32.gmra.mxu0 %vm53_vm0, %v28_v20  ;;  %402 = vmatmul.msk.f32.gmra.mxu1 %vm53_vm0, %v32_v21 }
  0x2b   :  { %406 = vmatmul.msk.f32.gmra.mxu2 %vm53_vm0, %v36_v22  ;;  %410 = vmatmul.msk.f32.gmra.mxu3 %vm53_vm0, %v40_v23 }
  0x8e   :  { %v119_v25 = vpop.f32.mrf.mxu0  ;;  %v131_v26 = vpop.f32.mrf.mxu1 }
  0x8f   :  { %v120_v27 = vadd.f32 %v645_v24, %v119_v25  ;;  %v132_v28 = vadd.f32 %v645_v24, %v131_v26 }
  0x91   :  { %167 = vst [vmem:[#allocation2] sm:$0xff] %v120_v27  ;;  %v307_v46 = vmul.f32 %v120_v27, %v120_v27  ;;  %v311_v63 = vmul.f32 %v132_v28, %v132_v28 }
  0x92   :  { %171 = vst [vmem:[#allocation2 + $0x20] sm:$0xff] %v132_v28 }
  0x96   :  { %v122_v29 = vpop.f32.mrf.mxu0  ;;  %v134_v30 = vpop.f32.mrf.mxu1 }
  0x97   :  { %v123_v31 = vadd.f32 %v645_v24, %v122_v29  ;;  %v135_v32 = vadd.f32 %v645_v24, %v134_v30  ;;  %v143_v33 = vpop.f32.mrf.mxu2  ;;  %v155_v34 = vpop.f32.mrf.mxu3 }
  0x98   :  { %v652_v35 = vadd.f32 %v645_v24, %v143_v33  ;;  %v655_v36 = vadd.f32 %v645_v24, %v155_v34 }
  0x99   :  { %168 = vst [vmem:[#allocation2 + $0x8] sm:$0xff] %v123_v31  ;;  %v308_v45 = vmul.f32 %v123_v31, %v123_v31  ;;  %v283_v47 = vadd.f32 %v123_v31, %v120_v27  ;;  %v312_v2 = vmul.f32 %v135_v32, %v135_v32 }
  0x9a   :  { %172 = vst [vmem:[#allocation2 + $0x28] sm:$0xff] %v135_v32  ;;  %v315_v15 = vmul.f32 %v652_v35, %v652_v35  ;;  %v319_v27 = vmul.f32 %v655_v36, %v655_v36 }
  0x9b   :  { %175 = vst [vmem:[#allocation2 + $0x40] sm:$0xff] %v652_v35  ;;  %v323_v51 = vadd.f32 %v308_v45, %v307_v46 }
  0x9c   :  { %179 = vst [vmem:[#allocation2 + $0x60] sm:$0xff] %v655_v36 }
  0x9e   :  { %v125_v37 = vpop.f32.mrf.mxu0  ;;  %v137_v38 = vpop.f32.mrf.mxu1 }
  0x9f   :  { %v126_v39 = vadd.f32 %v645_v24, %v125_v37  ;;  %v138_v40 = vadd.f32 %v645_v24, %v137_v38  ;;  %v146_v41 = vpop.f32.mrf.mxu2  ;;  %v158_v42 = vpop.f32.mrf.mxu3 }
  0xa0   :  { %v147_v43 = vadd.f32 %v645_v24, %v146_v41  ;;  %v663_v44 = vadd.f32 %v645_v24, %v158_v42 }
  0xa1   :  { %169 = vst [vmem:[#allocation2 + $0x10] sm:$0xff] %v126_v39  ;;  %v309_v48 = vmul.f32 %v126_v39, %v126_v39  ;;  %v284_v52 = vadd.f32 %v283_v47, %v126_v39  ;;  %v313_v6 = vmul.f32 %v138_v40, %v138_v40 }
  0xa2   :  { %173 = vst [vmem:[#allocation2 + $0x30] sm:$0xff] %v138_v40  ;;  %v316_v18 = vmul.f32 %v147_v43, %v147_v43  ;;  %v320_v30 = vmul.f32 %v663_v44, %v663_v44 }
  0xa3   :  { %176 = vst [vmem:[#allocation2 + $0x48] sm:$0xff] %v147_v43  ;;  %v324_v60 = vadd.f32 %v323_v51, %v309_v48 }
  0xa4   :  { %180 = vst [vmem:[#allocation2 + $0x68] sm:$0xff] %v663_v44 }
  0xa6   :  { %v128_v49 = vpop.f32.mrf.mxu0  ;;  %v140_v50 = vpop.f32.mrf.mxu1 }
  0xa7   :  { %v129_v53 = vadd.f32 %v645_v24, %v128_v49  ;;  %v141_v54 = vadd.f32 %v645_v24, %v140_v50  ;;  %v149_v55 = vpop.f32.mrf.mxu2  ;;  %v161_v56 = vpop.f32.mrf.mxu3  ;;  %v282_v50 = vld [vmem:[#allocation4] sm:$0x1] }
  0xa8   :  { %v150_v58 = vadd.f32 %v645_v24, %v149_v55  ;;  %v162_v59 = vadd.f32 %v645_v24, %v161_v56 }
  0xa9   :  { %170 = vst [vmem:[#allocation2 + $0x18] sm:$0xff] %v129_v53  ;;  %v285_v61 = vadd.f32 %v284_v52, %v129_v53  ;;  %v310_v62 = vmul.f32 %v129_v53, %v129_v53  ;;  %v314_v8 = vmul.f32 %v141_v54, %v141_v54  ;;  %v306_v52 = vld [vmem:[#allocation6] sm:$0x1] }
  0xaa   :  { %174 = vst [vmem:[#allocation2 + $0x38] sm:$0xff] %v141_v54  ;;  %v317_v22 = vmul.f32 %v150_v58, %v150_v58  ;;  %v321_v34 = vmul.f32 %v162_v59, %v162_v59 }
  0xab   :  { %v286_v0 = vadd.f32 %v285_v61, %v132_v28  ;;  %v325_v1 = vadd.f32 %v324_v60, %v310_v62  ;;  %177 = vst [vmem:[#allocation2 + $0x50] sm:$0xff] %v150_v58 }
  0xac   :  { %181 = vst [vmem:[#allocation2 + $0x70] sm:$0xff] %v162_v59 }
  0xad   :  { %v326_v3 = vadd.f32 %v325_v1, %v311_v63  ;;  %v287_v4 = vadd.f32 %v286_v0, %v135_v32 }
  0xaf   :  { %v288_v5 = vadd.f32 %v287_v4, %v138_v40  ;;  %v327_v7 = vadd.f32 %v326_v3, %v312_v2  ;;  %v152_v9 = vpop.f32.mrf.mxu2  ;;  %v164_v10 = vpop.f32.mrf.mxu3 }
  0xb0   :  { %v153_v11 = vadd.f32 %v645_v24, %v152_v9  ;;  %v165_v12 = vadd.f32 %v645_v24, %v164_v10 }
  0xb1   :  { %v328_v13 = vadd.f32 %v327_v7, %v313_v6  ;;  %v289_v14 = vadd.f32 %v288_v5, %v141_v54 }
  0xb2   :  { %178 = vst [vmem:[#allocation2 + $0x58] sm:$0xff] %v153_v11  ;;  %v318_v24 = vmul.f32 %v153_v11, %v153_v11  ;;  %v322_v37 = vmul.f32 %v165_v12, %v165_v12 }
  0xb3   :  { %v290_v16 = vadd.f32 %v289_v14, %v652_v35  ;;  %v329_v17 = vadd.f32 %v328_v13, %v314_v8  ;;  %182 = vst [vmem:[#allocation2 + $0x78] sm:$0xff] %v165_v12 }
  0xb4   :  { %358 = dma.vmem_to_hbm [thread:$0]  %s351_s2, 2048, %s353_s18, [#allocation3], %s520_s3, %s520_s3, %s521_s19  }
  0xb5   :  { %v330_v19 = vadd.f32 %v329_v17, %v315_v15  ;;  %v291_v20 = vadd.f32 %v290_v16, %v147_v43 }
  0xb7   :  { %v292_v21 = vadd.f32 %v291_v20, %v150_v58  ;;  %v331_v23 = vadd.f32 %v330_v19, %v316_v18 }
  0xb9   :  { %v332_v25 = vadd.f32 %v331_v23, %v317_v22  ;;  %v293_v26 = vadd.f32 %v292_v21, %v153_v11 }
  0xbb   :  { %v294_v28 = vadd.f32 %v293_v26, %v655_v36  ;;  %v333_v29 = vadd.f32 %v332_v25, %v318_v24 }
  0xbd   :  { %v334_v31 = vadd.f32 %v333_v29, %v319_v27  ;;  %v295_v32 = vadd.f32 %v294_v28, %v663_v44 }
  0xbf   :  { %v296_v33 = vadd.f32 %v295_v32, %v162_v59  ;;  %v335_v35 = vadd.f32 %v334_v31, %v320_v30 }
  0xc1   :  { %v336_v38 = vadd.f32 %v335_v35, %v321_v34  ;;  %v297_v39 = vadd.f32 %v296_v33, %v165_v12 }
  0xc3   :  { %v298_v40 = vrot.slane %v297_v39, 4  ;;  %v337_v41 = vadd.f32 %v336_v38, %v322_v37 }
  0xc5   :  { %v299_v42 = vadd.f32 %v298_v40, %v297_v39  ;;  %v338_v43 = vrot.slane %v337_v41, 4 }
  0xc7   :  { %v300_v45 = vrot.slane %v299_v42, 2  ;;  %v339_v46 = vadd.f32 %v338_v43, %v337_v41 }
  0xc9   :  { %v301_v36 = vadd.f32 %v300_v45, %v299_v42  ;;  %v340_v47 = vrot.slane %v339_v46, 2 }
  0xcb   :  { %v302_v48 = vrot.slane %v301_v36, 1  ;;  %v341_v49 = vadd.f32 %v340_v47, %v339_v46 }
  0xcd   :  { %v303_v44 = vadd.f32 %v302_v48, %v301_v36  ;;  %v342_v51 = vrot.slane %v341_v49, 1 }
  0xcf   :  { %v304_v53 = vadd.f32 %v303_v44, %v282_v50  ;;  %v343_v54 = vadd.f32 %v342_v51, %v341_v49 }
  0xd1   :  { %305 = vst [vmem:[#allocation4] sm:$0x1] %v304_v53  ;;  %v344_v55 = vadd.f32 %v343_v54, %v306_v52 }
  0xd2   :  { %369 = dma.vmem_to_hbm [thread:$0]  %s365_s21, 16, %s367_s24, [#allocation5]  }
  0xd3   :  { %345 = vst [vmem:[#allocation6] sm:$0x1] %v344_v55 }
  0xd4   :  { %380 = dma.vmem_to_hbm [thread:$0]  %s376_s26, 16, %s378_s29, [#allocation5]  }
  0xd5   :  { %514 = dma.done.wait [#allocation3], 2048  }
  0xd6   :  { %515 = vsyncadd [#allocation3], 4294965248 }
  0xd7   :  { %516 = dma.done.wait [#allocation5], 32  }
  0xd8   :  { %517 = vsyncadd [#allocation5], 4294967264 }
  0xd9   :  { %393 = vsyncpa [#allocation3], 1 }
  0xda   :  { %394 = vsyncpa [#allocation5], 1 }

</bundles_post_ra>
